<compile_context>
chip_gen: v7x
topology: tpu7x:2x2x1
jax: 0.10.0
libtpu: 0.0.40
codegen_flags: <defaults>
</compile_context>

<pallas_src>
import functools

import jax
import jax.numpy as jnp
from jax.experimental import pallas as pl
from jax.experimental.pallas import tpu as pltpu


def _raan_kernel(x_ref, w1s_ref, b1s_ref, w2bd_ref, b2_ref, wfc_ref, bfc_ref,
                 out_ref, att_ref, *, num_filters, num_features, batch_tile,
                 attention):
    F = num_filters
    N = num_features
    TB = batch_tile

    x2 = x_ref[...]                       # (TB*N, D), f32
    bfc = bfc_ref[0]                      # scalar bias from SMEM

    # Shared fc hoisted through the weighted sum:
    #   (sum_n a_n * x_n) @ wfc == sum_n a_n * (x_n @ wfc)
    xw = jnp.dot(x2, wfc_ref[...], preferred_element_type=jnp.float32)  # (TB*N, 1)
    xw3 = xw.reshape(TB, N, 1)                                          # (TB, N, 1)

    if attention:
        # All F attention MLPs fused: one (D -> F*H) matmul + ReLU, then one
        # block-diagonal (F*H -> F) matmul for the per-filter scores.
        h = jnp.maximum(
            jnp.dot(x2, w1s_ref[...], preferred_element_type=jnp.float32)
            + b1s_ref[...], 0.0)                                        # (TB*N, F*H)
        s = jnp.dot(h, w2bd_ref[...], preferred_element_type=jnp.float32) \
            + b2_ref[...]                                               # (TB*N, F)
        s3 = s.reshape(TB, N, F)
        # Softmax over the feature axis N (PyTorch dim=1), per batch & filter.
        s3 = s3 - jnp.max(s3, axis=1, keepdims=True)
        e = jnp.exp(s3)
        denom = jnp.sum(e, axis=1, keepdims=True)                       # (TB, 1, F)
        r = pl.reciprocal(denom, approx=True)                           # EUP vrcp
        r = r * (2.0 - denom * r)                                       # Newton step
        a = e * r                                                       # (TB, N, F)
    else:
        a = jnp.full((TB, N, F), 1.0 / N, dtype=jnp.float32)

    att_ref[...] = a                                                    # one dense store

    # y[b, f] = tanh(sum_n a[b, n, f] * xw[b, n] + bfc) * 2
    y = jnp.sum(a * xw3, axis=1) + bfc                                  # (TB, F)
    out_ref[...] = jnp.tanh(y) * 2.0                                    # single store


def _pick_batch_tile(B, N, D, F, budget_bytes=4 * 1024 * 1024):
    """Largest batch tile whose x+att tile fits a conservative VMEM budget
    (so 2x double-buffering stays well under the default scoped VMEM on
    v5e/v6e/v7x).  When tiling (TB < B), TB must divide B and be a multiple
    of 8 so all block shapes satisfy the (8, 128) rule."""
    per_batch = 4 * N * (D + F + 1)
    cap = max(1, budget_bytes // max(per_batch, 1))
    if cap >= B:
        return B
    for tb in range(min(cap, B), 0, -1):
        if B % tb == 0 and tb % 8 == 0:
            return tb
    return B  # fallback: whole batch in one tile


def raan_forward(x, params, *, num_filters, attention, batch_tile=None):
    w1, b1, w2, b2, wfc, bfc = params
    B, N, D = x.shape
    F = num_filters
    H = w1.shape[-1]
    FH = F * H

    # Restructure weights once at the XLA level (cheap, jit-cached).
    w1s = jnp.transpose(w1, (1, 0, 2)).reshape(D, FH)        # (D, F*H)
    b1s = b1[:, 0, :].reshape(1, FH)                         # (1, F*H)
    w2bd = jnp.zeros((FH, F), dtype=jnp.float32)             # block-diagonal
    for i in range(F):
        w2bd = w2bd.at[i * H:(i + 1) * H, i].set(w2[i, :, 0])
    b2row = b2[:, 0, 0].reshape(1, F)                        # (1, F)
    bfc_s = bfc.reshape(1).astype(jnp.float32)               # (1,) scalar -> SMEM

    tb = batch_tile if batch_tile is not None else _pick_batch_tile(B, N, D, F)
    grid = (B // tb,)
    x_flat = x.reshape(B * N, D).astype(jnp.float32)         # flatten outside kernel

    kernel = functools.partial(
        _raan_kernel, num_filters=F, num_features=N, batch_tile=tb,
        attention=attention)

    out, att = pl.pallas_call(
        kernel,
        out_shape=(
            jax.ShapeDtypeStruct((B, F), jnp.float32),
            jax.ShapeDtypeStruct((B, N, F), jnp.float32),
        ),
        grid=grid,
        in_specs=[
            pl.BlockSpec((tb * N, D), lambda i: (i, 0)),     # x batch tile
            pl.BlockSpec((D, FH), lambda i: (0, 0)),         # stacked w1 (resident)
            pl.BlockSpec((1, FH), lambda i: (0, 0)),
            pl.BlockSpec((FH, F), lambda i: (0, 0)),         # block-diag w2
            pl.BlockSpec((1, F), lambda i: (0, 0)),
            pl.BlockSpec((D, 1), lambda i: (0, 0)),          # shared fc weight
            pl.BlockSpec(memory_space=pltpu.MemorySpace.SMEM),  # bfc scalar
        ],
        out_specs=(
            pl.BlockSpec((tb, F), lambda i: (i, 0)),
            pl.BlockSpec((tb, N, F), lambda i: (i, 0, 0)),
        ),
        compiler_params=pltpu.CompilerParams(
            dimension_semantics=("parallel",)),
    )(x_flat, w1s, b1s, w2bd, b2row, wfc, bfc_s)

    all_outputs = out                     # (B, F)
    all_atts = att[..., None]             # (B, N, F, 1)
    return all_outputs, all_atts


def raan_reference(x, params, *, num_filters, attention):
    """Plain-JAX replica of the PyTorch forward for verification."""
    w1, b1, w2, b2, wfc, bfc = params
    B, N, D = x.shape
    atts = []
    for i in range(num_filters):
        if attention:
            h = jnp.maximum(x @ w1[i] + b1[i], 0.0)
            s = h @ w2[i] + b2[i]                 # (B, N, 1)
            a = jax.nn.softmax(s, axis=1)
        else:
            a = jnp.full((B, N, 1), 1.0 / N, dtype=jnp.float32)
        atts.append(a)
    all_atts = jnp.stack(atts, axis=2)            # (B, N, F, 1)
    outs = []
    for i in range(num_filters):
        tmp = (x * all_atts[:, :, i, :]).sum(axis=1)          # (B, D)
        outs.append(jnp.tanh(tmp @ wfc + bfc)[:, 0] * 2.0)    # (B,)
    all_outputs = jnp.stack(outs, axis=1)         # (B, F)
    return all_outputs, all_atts


def init_params(key, *, num_filters, input_size, fc_output):
    """Deterministic PyTorch-style (uniform +/- 1/sqrt(fan_in)) init."""
    ks = jax.random.split(key, 6)
    lim1 = 1.0 / jnp.sqrt(input_size)
    lim2 = 1.0 / jnp.sqrt(fc_output)
    w1 = jax.random.uniform(ks[0], (num_filters, input_size, fc_output),
                            jnp.float32, -lim1, lim1)
    b1 = jax.random.uniform(ks[1], (num_filters, 1, fc_output),
                            jnp.float32, -lim1, lim1)
    w2 = jax.random.uniform(ks[2], (num_filters, fc_output, 1),
                            jnp.float32, -lim2, lim2)
    b2 = jax.random.uniform(ks[3], (num_filters, 1, 1),
                            jnp.float32, -lim2, lim2)
    wfc = jax.random.uniform(ks[4], (input_size, 1), jnp.float32, -lim1, lim1)
    bfc = jax.random.uniform(ks[5], (1, 1), jnp.float32, -lim1, lim1)
    return (w1, b1, w2, b2, wfc, bfc)


if __name__ == "__main__":
    # Small shapes consistent with the module's forward:
    B = 2              # batch
    N = 8              # num_features (segments)
    D = 32             # input_size
    H = 16             # fc_output
    F = 3              # num_filters

    key = jax.random.PRNGKey(0)
    k_x, k_p = jax.random.split(key)
    x = jax.random.normal(k_x, (B, N, D), jnp.float32)
    params = init_params(k_p, num_filters=F, input_size=D, fc_output=H)

    ok = True
    for attention in (True, False):
        all_outputs, all_atts = raan_forward(
            x, params, num_filters=F, attention=attention)
        jax.block_until_ready((all_outputs, all_atts))

        ref_outputs, ref_atts = raan_reference(
            x, params, num_filters=F, attention=attention)

        assert all_outputs.shape == (B, F)
        assert all_atts.shape == (B, N, F, 1)
        # 1e-4 tolerance: algebraic fc hoist + fused matmuls + Newton-refined
        # approx reciprocal slightly change FP summation order.
        ok &= bool(jnp.allclose(all_outputs, ref_outputs, atol=1e-4, rtol=1e-4))
        ok &= bool(jnp.allclose(all_atts, ref_atts, atol=1e-4, rtol=1e-4))

    assert ok
    print("KERNEL_OK")
</pallas_src>

<mosaic_0001>
module attributes {stable_mosaic.version = 11 : i64} {
  func.func @_raan_kernel(%arg0: i32, %arg1: memref<16x32xf32, #tpu.memory_space<vmem>>, %arg2: memref<32x48xf32, #tpu.memory_space<vmem>>, %arg3: memref<1x48xf32, #tpu.memory_space<vmem>>, %arg4: memref<48x3xf32, #tpu.memory_space<vmem>>, %arg5: memref<1x3xf32, #tpu.memory_space<vmem>>, %arg6: memref<32x1xf32, #tpu.memory_space<vmem>>, %arg7: memref<1xf32, #tpu.memory_space<smem>>, %arg8: memref<2x3xf32, #tpu.memory_space<vmem>>, %arg9: memref<2x8x3xf32, #tpu.memory_space<vmem>>) attributes {dimension_semantics = [#tpu.dimension_semantics<parallel>], iteration_bounds = array<i64: 1>, scalar_prefetch = 0 : i64, scratch_operands = 0 : i64, tpu.core_type = #tpu.core_type<tc>, window_params = [{transform_indices = @transform_0, window_bounds = array<i64: 16, 32>}, {pipeline_mode = #tpu.pipeline_mode<synchronous>, transform_indices = @transform_1, window_bounds = array<i64: 32, 48>}, {pipeline_mode = #tpu.pipeline_mode<synchronous>, transform_indices = @transform_2, window_bounds = array<i64: 1, 48>}, {pipeline_mode = #tpu.pipeline_mode<synchronous>, transform_indices = @transform_3, window_bounds = array<i64: 48, 3>}, {pipeline_mode = #tpu.pipeline_mode<synchronous>, transform_indices = @transform_4, window_bounds = array<i64: 1, 3>}, {pipeline_mode = #tpu.pipeline_mode<synchronous>, transform_indices = @transform_5, window_bounds = array<i64: 32, 1>}, {transform_indices = @transform_6, window_bounds = array<i64: 1>}, {transform_indices = @transform_7, window_bounds = array<i64: 2, 3>}, {transform_indices = @transform_8, window_bounds = array<i64: 2, 8, 3>}]} {
    %c0 = arith.constant 0 : index
    %c0_0 = arith.constant 0 : index
    %0 = vector.load %arg1[%c0, %c0_0] : memref<16x32xf32, #tpu.memory_space<vmem>>, vector<16x32xf32>
    %c0_1 = arith.constant 0 : index
    %1 = memref.load %arg7[%c0_1] : memref<1xf32, #tpu.memory_space<smem>>
    %c0_2 = arith.constant 0 : index
    %c0_3 = arith.constant 0 : index
    %2 = vector.load %arg6[%c0_2, %c0_3] : memref<32x1xf32, #tpu.memory_space<vmem>>, vector<32x1xf32>
    %cst = arith.constant dense<0.000000e+00> : vector<16x1xf32>
    %3 = tpu.matmul %0, %2, %cst {dimension_numbers = #tpu.dot_dimension_numbers<[1], [0], [0], [1], [0, 0, 1, 1], [], []>} : vector<16x32xf32>, vector<32x1xf32>, vector<16x1xf32> -> vector<16x1xf32>
    %4 = vector.shape_cast %3 : vector<16x1xf32> to vector<2x8x1xf32>
    %c0_4 = arith.constant 0 : index
    %c0_5 = arith.constant 0 : index
    %5 = vector.load %arg2[%c0_4, %c0_5] : memref<32x48xf32, #tpu.memory_space<vmem>>, vector<32x48xf32>
    %cst_6 = arith.constant dense<0.000000e+00> : vector<16x48xf32>
    %6 = tpu.matmul %0, %5, %cst_6 {dimension_numbers = #tpu.dot_dimension_numbers<[1], [0], [0], [1], [0, 0, 1, 1], [], []>} : vector<16x32xf32>, vector<32x48xf32>, vector<16x48xf32> -> vector<16x48xf32>
    %c0_7 = arith.constant 0 : index
    %c0_8 = arith.constant 0 : index
    %7 = vector.load %arg3[%c0_7, %c0_8] : memref<1x48xf32, #tpu.memory_space<vmem>>, vector<1x48xf32>
    %8 = vector.broadcast %7 : vector<1x48xf32> to vector<16x48xf32>
    %9 = arith.addf %6, %8 : vector<16x48xf32>
    %cst_9 = arith.constant 0.000000e+00 : f32
    %10 = vector.broadcast %cst_9 : f32 to vector<16x48xf32>
    %11 = arith.maximumf %9, %10 : vector<16x48xf32>
    %c0_10 = arith.constant 0 : index
    %c0_11 = arith.constant 0 : index
    %12 = vector.load %arg4[%c0_10, %c0_11] : memref<48x3xf32, #tpu.memory_space<vmem>>, vector<48x3xf32>
    %cst_12 = arith.constant dense<0.000000e+00> : vector<16x3xf32>
    %13 = tpu.matmul %11, %12, %cst_12 {dimension_numbers = #tpu.dot_dimension_numbers<[1], [0], [0], [1], [0, 0, 1, 1], [], []>} : vector<16x48xf32>, vector<48x3xf32>, vector<16x3xf32> -> vector<16x3xf32>
    %c0_13 = arith.constant 0 : index
    %c0_14 = arith.constant 0 : index
    %14 = vector.load %arg5[%c0_13, %c0_14] : memref<1x3xf32, #tpu.memory_space<vmem>>, vector<1x3xf32>
    %15 = vector.broadcast %14 : vector<1x3xf32> to vector<16x3xf32>
    %16 = arith.addf %13, %15 : vector<16x3xf32>
    %17 = vector.shape_cast %16 : vector<16x3xf32> to vector<2x8x3xf32>
    %cst_15 = arith.constant dense<0xFF800000> : vector<2x3xf32>
    %18 = vector.multi_reduction <maximumf>, %17, %cst_15 [1] : vector<2x8x3xf32> to vector<2x3xf32>
    %19 = vector.shape_cast %18 : vector<2x3xf32> to vector<2x1x3xf32>
    %20 = vector.broadcast %19 : vector<2x1x3xf32> to vector<2x8x3xf32>
    %21 = arith.subf %17, %20 : vector<2x8x3xf32>
    %22 = math.exp %21 : vector<2x8x3xf32>
    %cst_16 = arith.constant dense<0.000000e+00> : vector<2x3xf32>
    %23 = vector.multi_reduction <add>, %22, %cst_16 [1] : vector<2x8x3xf32> to vector<2x3xf32>
    %24 = vector.shape_cast %23 : vector<2x3xf32> to vector<2x1x3xf32>
    %25 = tpu.reciprocal %24 {approx = true} : vector<2x1x3xf32> -> vector<2x1x3xf32>
    %26 = arith.mulf %24, %25 : vector<2x1x3xf32>
    %cst_17 = arith.constant 2.000000e+00 : f32
    %27 = vector.broadcast %cst_17 : f32 to vector<2x1x3xf32>
    %28 = arith.subf %27, %26 : vector<2x1x3xf32>
    %29 = arith.mulf %25, %28 : vector<2x1x3xf32>
    %30 = vector.broadcast %29 : vector<2x1x3xf32> to vector<2x8x3xf32>
    %31 = arith.mulf %22, %30 : vector<2x8x3xf32>
    %c0_18 = arith.constant 0 : index
    %c0_19 = arith.constant 0 : index
    %c0_20 = arith.constant 0 : index
    %32 = vector.load %arg9[%c0_18, %c0_19, %c0_20] : memref<2x8x3xf32, #tpu.memory_space<vmem>>, vector<2x8x3xf32>
    tpu.vector_store %arg9[%c0_18, %c0_19, %c0_20], %31 {strides = array<i32>} : memref<2x8x3xf32, #tpu.memory_space<vmem>>, vector<2x8x3xf32>,
    %33 = vector.broadcast %4 : vector<2x8x1xf32> to vector<2x8x3xf32>
    %34 = arith.mulf %31, %33 : vector<2x8x3xf32>
    %cst_21 = arith.constant dense<0.000000e+00> : vector<2x3xf32>
    %35 = vector.multi_reduction <add>, %34, %cst_21 [1] : vector<2x8x3xf32> to vector<2x3xf32>
    %36 = vector.broadcast %1 : f32 to vector<2x3xf32>
    %37 = arith.addf %35, %36 : vector<2x3xf32>
    %38 = math.tanh %37 : vector<2x3xf32>
    %cst_22 = arith.constant 2.000000e+00 : f32
    %39 = vector.broadcast %cst_22 : f32 to vector<2x3xf32>
    %40 = arith.mulf %38, %39 : vector<2x3xf32>
    %c0_23 = arith.constant 0 : index
    %c0_24 = arith.constant 0 : index
    %41 = vector.load %arg8[%c0_23, %c0_24] : memref<2x3xf32, #tpu.memory_space<vmem>>, vector<2x3xf32>
    tpu.vector_store %arg8[%c0_23, %c0_24], %40 {strides = array<i32>} : memref<2x3xf32, #tpu.memory_space<vmem>>, vector<2x3xf32>,
    return
  }
  func.func @transform_0(%arg0: i32) -> (i32, i32) {
    %c0_i32 = arith.constant 0 : i32
    %c0_i32_0 = arith.constant 0 : i32
    return %arg0, %c0_i32 : i32, i32
  }
  func.func @transform_1(%arg0: i32) -> (i32, i32) {
    %c0_i32 = arith.constant 0 : i32
    %c0_i32_0 = arith.constant 0 : i32
    %c0_i32_1 = arith.constant 0 : i32
    return %c0_i32, %c0_i32_0 : i32, i32
  }
  func.func @transform_2(%arg0: i32) -> (i32, i32) {
    %c0_i32 = arith.constant 0 : i32
    %c0_i32_0 = arith.constant 0 : i32
    %c0_i32_1 = arith.constant 0 : i32
    return %c0_i32, %c0_i32_0 : i32, i32
  }
  func.func @transform_3(%arg0: i32) -> (i32, i32) {
    %c0_i32 = arith.constant 0 : i32
    %c0_i32_0 = arith.constant 0 : i32
    %c0_i32_1 = arith.constant 0 : i32
    return %c0_i32, %c0_i32_0 : i32, i32
  }
  func.func @transform_4(%arg0: i32) -> (i32, i32) {
    %c0_i32 = arith.constant 0 : i32
    %c0_i32_0 = arith.constant 0 : i32
    %c0_i32_1 = arith.constant 0 : i32
    return %c0_i32, %c0_i32_0 : i32, i32
  }
  func.func @transform_5(%arg0: i32) -> (i32, i32) {
    %c0_i32 = arith.constant 0 : i32
    %c0_i32_0 = arith.constant 0 : i32
    %c0_i32_1 = arith.constant 0 : i32
    return %c0_i32, %c0_i32_0 : i32, i32
  }
  func.func @transform_6(%arg0: i32) -> i32 {
    %c0_i32 = arith.constant 0 : i32
    %c0_i32_0 = arith.constant 0 : i32
    return %c0_i32 : i32
  }
  func.func @transform_7(%arg0: i32) -> (i32, i32) {
    %c0_i32 = arith.constant 0 : i32
    %c0_i32_0 = arith.constant 0 : i32
    return %arg0, %c0_i32 : i32, i32
  }
  func.func @transform_8(%arg0: i32) -> (i32, i32, i32) {
    %c0_i32 = arith.constant 0 : i32
    %c0_i32_0 = arith.constant 0 : i32
    %c0_i32_1 = arith.constant 0 : i32
    return %arg0, %c0_i32, %c0_i32_0 : i32, i32, i32
  }
}

</mosaic_0001>

<bundles_post_ra>
// kernel: tpu_custom_call.1
= control target key start
LH: loop header
LB: loop body
LE: loop exit
PB: predicated region body
PF: predicated region fallthrough
CT: control target
= control target key end

     0   :  { %vm37_vm0 = vcmask 261120   ;;  %s673_s0 = inlined_call_operand.vmem [shape: f32[16,32], index: 0, kind: input, shape index: {}]   ;;  %s674_s1 = inlined_call_operand.vmem [shape: f32[32,48], index: 1, kind: input, shape index: {}]   ;;  %s675_s2 = inlined_call_operand.vmem [shape: f32[1,48], index: 2, kind: input, shape index: {}]   ;;  %s676_s3 = inlined_call_operand.vmem [shape: f32[48,3], index: 3, kind: input, shape index: {}]   ;;  %s677_s4 = inlined_call_operand.vmem [shape: f32[1,3], index: 4, kind: input, shape index: {}]   ;;  %s678_s5 = inlined_call_operand.vmem [shape: f32[32,1], index: 5, kind: input, shape index: {}]   ;;  %s679_s6 = inlined_call_operand.<no memory space> [shape: f32[1], index: 6, kind: input, shape index: {}]   ;;  %s680_s7 = inlined_call_operand.hbm [shape: f32[2,3], index: 7, kind: output, shape index: {0}]   ;;  %s681_s8 = inlined_call_operand.vmem [shape: f32[2,8,3], index: 8, kind: output, shape index: {1}]  }
   0x1   :  { %v33_v0 = vld [vmem:[%s678_s5] sm:$0xff]  ;;  %v34_v1 = vld [vmem:[%s678_s5 + $0x8] sm:$0xff]  ;;  %v35_v2 = vld [vmem:[%s678_s5 + $0x10] sm:$0xff] }
   0x2   :  { %v472_v3 = vpack.c.bf16 %v34_v1, %v33_v0  ;;  %v36_v4 = vld [vmem:[%s678_s5 + $0x18] sm:$0xff]  ;;  %v30_v5 = vld [vmem:[%s673_s0] sm:$0xff]  ;;  %v120_v8 = vld [vmem:[%s674_s1 + $0x8] sm:$0xff] }
   0x3   :  { %v476_v6 = vpack.c.bf16 %v36_v4, %v35_v2  ;;  %443 = vmatprep.mubr.msk.f32.mxu1 %vm37_vm0, %v30_v5  ;;  %v119_v7 = vld [vmem:[%s674_s1] sm:$0xff] }
   0x4   :  { %473 = vmatprep.subr.bf16.mxu1 %v472_v3 }
   0x5   :  { %15 = vsyncpa [#allocation4], 0  ;;  %475 = vmatpush3.bf16.msra.mxu1 %v472_v3  ;;  %v480_v9 = vpack.c.bf16 %v120_v8, %v119_v7  ;;  %v121_v10 = vld [vmem:[%s674_s1 + $0x10] sm:$0xff]  ;;  %v122_v11 = vld [vmem:[%s674_s1 + $0x18] sm:$0xff]  ;;  %v539_v16 = vmov 0   ;;  %vm220_vm1 = vcmask 392192  }
   0x6   :  { %477 = vmatprep.subr.bf16.mxu1 %v476_v6  ;;  %v31_v12 = vld [vmem:[%s673_s0 + $0x8] sm:$0xff]  ;;  %v484_v13 = vpack.c.bf16 %v122_v11, %v121_v10  ;;  %v207_v14 = vld [vmem:[%s676_s3] sm:$0xff]  ;;  %502 = vset.pattern.permute.xlu0 %v539_v16  ;;  %v209_v18 = vld [vmem:[%s676_s3 + $0x10] sm:$0xff]  ;;  %vm302_vm2 = vcmask 23552   ;;  %vm384_vm3 = vcmask 1041409   ;;  %vm387_vm4 = vcmask 17408  }
   0x7   :  { %v208_v15 = vld [vmem:[%s676_s3 + $0x8] sm:$0xff]  ;;  %v210_v19 = vld [vmem:[%s676_s3 + $0x18] sm:$0xff]  ;;  %v211_v21 = vld [vmem:[%s676_s3 + $0x20] sm:$0xff] }
   0x8   :  { %v488_v17 = vpack.c.bf16 %v208_v15, %v207_v14  ;;  %v492_v20 = vpack.c.bf16 %v210_v19, %v209_v18  ;;  %v212_v22 = vld [vmem:[%s676_s3 + $0x28] sm:$0xff]  ;;  %v409_v26 = vld [vmem:[%s675_s2] ss:$0 sm:$0xff] }
   0x9   :  { %479 = vmatpush3.bf16.msra.mxu1 %v476_v6  ;;  %v496_v23 = vpack.c.bf16 %v212_v22, %v211_v21  ;;  %v412_v33 = vld [vmem:[%s677_s4] ss:$0 sm:$0xff] }
   0xa   :  { %481 = vmatprep.subr.bf16.mxu1 %v480_v9  ;;  %489 = vmatprep.subr.bf16.mxu0 %v488_v17 }
   0xb   :  { %491 = vmatpush3.bf16.msra.mxu0 %v488_v17 }
   0xc   :  { %444 = vmatmul.mubr.msk.f32.vlgmr.msra.gmra.mrb[0].mxu1 %vm37_vm0, %v31_v12  ;;  %493 = vmatprep.subr.bf16.mxu0 %v492_v20 }
   0xd   :  { %483 = vmatpush3.bf16.msra.mxu1 %v480_v9  ;;  %454 = vmatprep.mubr.msk.f32.mxu1 %vm37_vm0, %v30_v5 }
   0xe   :  { %485 = vmatprep.subr.bf16.mxu1 %v484_v13 }
   0xf   :  { %495 = vmatpush3.bf16.msra.mxu0 %v492_v20 }
  0x10   :  { %497 = vmatprep.subr.bf16.mxu0 %v496_v23 }
  0x11   :  { %487 = vmatpush3.bf16.msra.mxu1 %v484_v13 }
  0x13   :  { %499 = vmatpush3.bf16.msra.mxu0 %v496_v23 }
  0x14   :  { %455 = vmatmul.mubr.msk.f32.vlgmr.msra.gmra.mrb[2].mxu1 %vm37_vm0, %v31_v12 }
  0xdf   :  { %v445_v24 = vpop.f32.mrb[0].mxu1 }
  0xe0   :  { %v110_v25 = vpop.f32.mrb[1].mxu1 }
  0xe1   :  { %351 = vperm.xlu0 %502, %v110_v25  }
  0xe5   :  { %356 = vperm.xlu0 %502, %v445_v24  }
  0xe7   :  { %v456_v27 = vpop.f32.mrb[2].mxu1 }
  0xe8   :  { %v202_v28 = vadd.f32 %v456_v27, %v409_v26  ;;  %v196_v29 = vpop.f32.mrb[3].mxu1 }
  0xe9   :  { %v197_v30 = vadd.f32 %v409_v26, %v196_v29 }
  0xea   :  { %v206_v32 = vmax.f32 %v202_v28, 0.0 }
  0xeb   :  { %v205_v31 = vmax.f32 %v197_v30, 0.0 }
  0xed   :  { %469 = vmatprep.mubr.msk.f32.mxu0 %vm220_vm1, %v205_v31 }
  0xee   :  { %470 = vmatmul.mubr.msk.f32.vlgmr.msra.gmra.mrb[0].mxu0 %vm220_vm1, %v206_v32 }
 0x160   :  { %v352_v11 = vpop.permute.xlu0 %351 }
 0x164   :  { %v357_v18 = vpop.permute.xlu0 %356 }
 0x1c1   :  { %v471_v34 = vpop.f32.mrb[0].mxu0 }
 0x1c2   :  { %v299_v35 = vadd.f32 %v471_v34, %v412_v33  ;;  %v293_v36 = vpop.f32.mrb[1].mxu0  ;;  %v375_v34 = vstv %s679_s6 }
 0x1c3   :  { %v294_v37 = vadd.f32 %v412_v33, %v293_v36 }
 0x1c4   :  { %v310_v38 = vsel %vm302_vm2, %v299_v35, -inf }
 0x1c5   :  { %v311_v39 = vrot.slane %v310_v38, 4  ;;  %v303_v40 = vsel %vm302_vm2, %v294_v37, -inf }
 0x1c6   :  { %v304_v41 = vrot.slane %v303_v40, 4 }
 0x1c7   :  { %v312_v42 = vmax.f32 %v310_v38, %v311_v39 }
 0x1c8   :  { %v305_v43 = vmax.f32 %v303_v40, %v304_v41 }
 0x1c9   :  { %v313_v44 = vrot.slane %v312_v42, 2 }
 0x1ca   :  { %v306_v45 = vrot.slane %v305_v43, 2 }
 0x1cb   :  { %v314_v46 = vmax.f32 %v312_v42, %v313_v44 }
 0x1cc   :  { %v307_v47 = vmax.f32 %v305_v43, %v306_v45 }
 0x1cd   :  { %v315_v48 = vrot.slane %v314_v46, 1 }
 0x1ce   :  { %v308_v49 = vrot.slane %v307_v47, 1 }
 0x1cf   :  { %v316_v50 = vmax.f32 %v314_v46, %v315_v48 }
 0x1d0   :  { %v309_v51 = vmax.f32 %v307_v47, %v308_v49 }
 0x1d1   :  { %v318_v52 = vsub.f32 %v299_v35, %v316_v50 }
 0x1d2   :  { %v317_v53 = vsub.f32 %v294_v37, %v309_v51 }
 0x1d3   :  { %v321_v54 = vmul.f32 1.442695, %v318_v52 }
 0x1d4   :  { %v319_v55 = vmul.f32 1.442695, %v317_v53 }
 0x1d5   :  { %503 = vpow2.f32 %v321_v54 }
 0x1d6   :  { %505 = vpow2.f32 %v319_v55 }
 0x1df   :  { %v504_v56 = vpop.eup %503 }
 0x1e0   :  { %v506_v57 = vpop.eup %505  ;;  %v330_v58 = vsel %vm302_vm2, %v504_v56, 0.0 }
 0x1e1   :  { %v331_v59 = vrot.slane %v330_v58, 4  ;;  %v323_v60 = vsel %vm302_vm2, %v506_v57, 0.0 }
 0x1e2   :  { %v324_v61 = vrot.slane %v323_v60, 4 }
 0x1e3   :  { %v332_v62 = vadd.f32 %v331_v59, %v330_v58 }
 0x1e4   :  { %v325_v63 = vadd.f32 %v324_v61, %v323_v60 }
 0x1e5   :  { %v333_v0 = vrot.slane %v332_v62, 2 }
 0x1e6   :  { %v326_v1 = vrot.slane %v325_v63, 2 }
 0x1e7   :  { %v334_v2 = vadd.f32 %v333_v0, %v332_v62 }
 0x1e8   :  { %v327_v3 = vadd.f32 %v326_v1, %v325_v63 }
 0x1e9   :  { %v335_v4 = vrot.slane %v334_v2, 1 }
 0x1ea   :  { %v328_v5 = vrot.slane %v327_v3, 1 }
 0x1eb   :  { %v336_v6 = vadd.f32 %v335_v4, %v334_v2 }
 0x1ec   :  { %v329_v7 = vadd.f32 %v328_v5, %v327_v3 }
 0x1ed   :  { %507 = vrcp.f32 %v336_v6 }
 0x1ee   :  { %509 = vrcp.f32 %v329_v7 }
 0x1f7   :  { %v508_v8 = vpop.eup %507 }
 0x1f8   :  { %v510_v9 = vpop.eup %509  ;;  %v340_v10 = vmul.f32 %v508_v8, %v336_v6 }
 0x1f9   :  { %v339_v12 = vmul.f32 %v510_v9, %v329_v7 }
 0x1fa   :  { %v342_v13 = vsub.f32 2.0, %v340_v10 }
 0x1fb   :  { %v341_v14 = vsub.f32 2.0, %v339_v12 }
 0x1fc   :  { %v344_v15 = vmul.f32 %v508_v8, %v342_v13 }
 0x1fd   :  { %v343_v16 = vmul.f32 %v510_v9, %v341_v14 }
 0x1fe   :  { %v346_v17 = vmul.f32 %v504_v56, %v344_v15 }
 0x1ff   :  { %v345_v19 = vmul.f32 %v506_v57, %v343_v16 }
 0x200   :  { %348 = vst.msk [vmem:[%s681_s8 + $0x8] sm:$0xff] %vm302_vm2, %v346_v17  ;;  %v360_v20 = vmul.f32 %v357_v18, %v346_v17 }
 0x201   :  { %347 = vst.msk [vmem:[%s681_s8] sm:$0xff] %vm302_vm2, %v345_v19  ;;  %v359_v21 = vmul.f32 %v352_v11, %v345_v19  ;;  %s540_s8 = smov [#allocation3]  }
 0x202   :  { %v368_v22 = vsel %vm302_vm2, %v360_v20, 0.0  ;;  %s395_s5 = sshll.u32 %s540_s8, 4  ;;  %s396_s5 = int_to_ptr.vmem [resolvable:$true] %s395_s5 }
 0x203   :  { %v361_v23 = vsel %vm302_vm2, %v359_v21, 0.0  ;;  %v369_v24 = vrot.slane %v368_v22, 4  ;;  %s515_s19 = scalar_lea.vmem %s396_s5, 32  ;;  %p520_p1 = scmp.lt.s32.totalorder %s396_s5, %s396_s5 }
 0x204   :  { %v362_v25 = vrot.slane %v361_v23, 4  ;;  %p516_p0 = scmp.ne.s32.totalorder %s396_s5, %s515_s19  ;;  %p521_p2 = scmp.lt.s32.totalorder %s515_s19, %s515_s19 }
 0x205   :  { %v370_v26 = vadd.f32 %v369_v24, %v368_v22 }
 0x206   :  { %v363_v27 = vadd.f32 %v362_v25, %v361_v23  ;;  %p522_p3 = por %p521_p2, %p520_p1 }
 0x207   :  { %v371_v28 = vrot.slane %v370_v26, 2 }
 0x208   :  { %v364_v29 = vrot.slane %v363_v27, 2  ;;  %p523_p4 = pnand %p522_p3, %p516_p0 }
 0x209   :  { %v372_v30 = vadd.f32 %v371_v28, %v370_v26 }
 0x20a   :  { %v365_v31 = vadd.f32 %v364_v29, %v363_v27 }
 0x20b   :  { %v373_v32 = vrot.slane %v372_v30, 1 }
 0x20c   :  { %v366_v33 = vrot.slane %v365_v31, 1 }
 0x20d   :  { %v374_v35 = vadd.f32 %v373_v32, %v372_v30 }
 0x20e   :  { %v367_v36 = vadd.f32 %v366_v33, %v365_v31 }
 0x20f   :  { %v377_v37 = vadd.f32 %v375_v34, %v374_v35 }
 0x210   :  { %v376_v38 = vadd.f32 %v375_v34, %v367_v36 }
 0x211   :  { %511 = vtanh.f32 %v377_v37 }
 0x212   :  { %513 = vtanh.f32 %v376_v38 }
 0x21b   :  { %v512_v39 = vpop.eup %511 }
 0x21c   :  { %v514_v40 = vpop.eup %513  ;;  %v381_v41 = vmul.f32 2.0, %v512_v39 }
 0x21d   :  { %v380_v42 = vmul.f32 2.0, %v514_v40 }
 0x21f   :  { %v385_v43 = vsel %vm384_vm3, %v381_v41, %v380_v42 }
 0x220   :  { %388 = vst.msk [vmem:[#allocation3] sm:$0x3] %vm387_vm4, %v385_v43 }
 0x221   :  { %526 = shalt.err (!%p523_p4)
}
 0x222   :  { %s527_s21 = scalar_lea.hbm %s680_s7, 32 }
 0x223   :  { %p528_p5 = scmp.ne.s32.totalorder %s680_s7, %s527_s21  ;;  %p531_p6 = scmp.lt.u32.totalorder %s527_s21, %s680_s7 }
 0x225   :  { %p533_p7 = pnand %p531_p6, %p528_p5 }
 0x227   :  { %536 = shalt.err (!%p533_p7)
}
 0x228   :  { %398 = dma.vmem_to_hbm [thread:$0]  %s396_s5, 32, %s680_s7, [#allocation4]  }
 0x229   :  { %537 = dma.done.wait [#allocation4], 32  }
 0x22a   :  { %538 = vsyncadd [#allocation4], 4294967264 }
 0x22b   :  { %406 = vsyncpa [#allocation4], 1 }

</bundles_post_ra>
